<compile_context>
chip_gen: v6e
topology: v6e:2x2x1
jax: 0.10.0
libtpu: 0.0.40
codegen_flags: <defaults>
</compile_context>

<pallas_src>
import functools

import jax
import jax.numpy as jnp
from jax.experimental import pallas as pl
from jax.experimental.pallas import tpu as pltpu

HIDDEN = 200          # logical hidden size of the torch module
HIDDEN_PAD = 256      # padded hidden size (multiple of 128)
HEAD_HALF = 64        # mu occupies lanes [0:64), sigma lanes [64:128)
OUT_PAD = 128         # single lane tile for both heads


def _actor_kernel(x_ref, w1_ref, b1_ref, wh_ref, bh_ref, out_ref):
    # bf16 tiles in, f32 accumulation on the MXU.
    x = x_ref[...]

    # a1 = relu6(x @ W1 + b1)   (padded hidden lanes of a1 are exactly 0:
    # zero W1 columns, zero bias, relu6(0) = 0)
    a1 = jnp.dot(x, w1_ref[...], preferred_element_type=jnp.float32) + b1_ref[...]
    a1 = jnp.clip(a1, 0.0, 6.0)

    # Fused head projection onto ONE 128-lane tile:
    #   lanes [0:64)  -> mu head,  lanes [64:128) -> sigma head.
    h = jnp.dot(a1.astype(jnp.bfloat16), wh_ref[...],
                preferred_element_type=jnp.float32) + bh_ref[...]

    # Per-head activation with a lane mask (single full-tile elementwise pass,
    # lane-dense unmasked store).
    lane = jax.lax.broadcasted_iota(jnp.int32, h.shape, dimension=1)
    mu = 2.0 * jnp.tanh(h)
    # numerically-stable softplus: log1p(exp(-|h|)) + max(h, 0)
    sigma = jnp.log1p(jnp.exp(-jnp.abs(h))) + jnp.maximum(h, 0.0) + 0.001
    out_ref[...] = jnp.where(lane < HEAD_HALF, mu, sigma)


def _round_up(n, m):
    return ((n + m - 1) // m) * m


@functools.partial(jax.jit, static_argnames=("a_dim", "tb"))
def actor_forward(x, packed_params, *, a_dim, tb=2048):
    """x: (B, s_dim) f32.  packed_params from pack_params().
    Returns (mu, sigma), each (B, a_dim) f32."""
    w1, b1, wh, bh = packed_params
    B, s_dim = x.shape

    # Batch tile selection:
    #  * tiny batch (<=8): one tile of 8 rows
    #  * medium batch: split into (at least) 2 tiles so the "parallel" grid
    #    axis can shard across both TensorCores on v7x
    #  * large batch: tiles of `tb` (amortizes per-grid-step overhead)
    B8 = _round_up(B, 8)
    if B8 <= 8:
        TB = 8
    elif B8 <= 2 * tb:
        TB = _round_up(-(-B8 // 2), 8)   # ceil(B8 / 2), rounded up to 8
    else:
        TB = tb

    B_pad = _round_up(B, TB)
    if B_pad != B:
        x = jnp.pad(x, ((0, B_pad - B), (0, 0)))

    # bf16 MXU inputs; accumulation stays f32 inside the kernel.
    x = x.astype(jnp.bfloat16)

    grid = (B_pad // TB,)

    out = pl.pallas_call(
        _actor_kernel,
        out_shape=jax.ShapeDtypeStruct((B_pad, OUT_PAD), jnp.float32),
        grid=grid,
        in_specs=[
            pl.BlockSpec((TB, s_dim), lambda i: (i, 0)),        # x tile
            pl.BlockSpec(w1.shape, lambda i: (0, 0)),           # W1 (resident)
            pl.BlockSpec(b1.shape, lambda i: (0, 0)),           # b1
            pl.BlockSpec(wh.shape, lambda i: (0, 0)),           # fused head W
            pl.BlockSpec(bh.shape, lambda i: (0, 0)),           # fused head b
        ],
        out_specs=pl.BlockSpec((TB, OUT_PAD), lambda i: (i, 0)),
        compiler_params=pltpu.CompilerParams(
            dimension_semantics=("parallel",),
        ),
    )(x, w1, b1, wh, bh)

    mu = out[:B, :a_dim]
    sigma = out[:B, HEAD_HALF:HEAD_HALF + a_dim]
    return mu, sigma


def init_params(key, s_dim, a_dim):
    """set_init: normal(mean=0, std=0.1) weights, zero biases.
    Weights stored as (in, out) — transpose of torch Linear's (out, in)."""
    k1, k2, k3 = jax.random.split(key, 3)
    w1 = 0.1 * jax.random.normal(k1, (s_dim, HIDDEN), jnp.float32)
    b1 = jnp.zeros((1, HIDDEN), jnp.float32)
    wmu = 0.1 * jax.random.normal(k2, (HIDDEN, a_dim), jnp.float32)
    bmu = jnp.zeros((1, a_dim), jnp.float32)
    ws = 0.1 * jax.random.normal(k3, (HIDDEN, a_dim), jnp.float32)
    bs = jnp.zeros((1, a_dim), jnp.float32)
    return (w1, b1, wmu, bmu, ws, bs)


def pack_params(params):
    """Zero-pad HIDDEN -> 256, fuse the two heads into one 128-lane weight
    (mu head in lanes [0:a_dim), sigma head in lanes [64:64+a_dim)), and cast
    matmul weights to bf16 (biases stay f32)."""
    w1, b1, wmu, bmu, ws, bs = params
    s_dim = w1.shape[0]
    a_dim = wmu.shape[1]
    assert a_dim <= HEAD_HALF, (
        f"a_dim={a_dim} must fit in half a lane tile ({HEAD_HALF})")

    w1_p = jnp.zeros((s_dim, HIDDEN_PAD), jnp.float32).at[:, :HIDDEN].set(w1)
    b1_p = jnp.zeros((1, HIDDEN_PAD), jnp.float32).at[:, :HIDDEN].set(b1)

    wh = jnp.zeros((HIDDEN_PAD, OUT_PAD), jnp.float32)
    wh = wh.at[:HIDDEN, :a_dim].set(wmu)
    wh = wh.at[:HIDDEN, HEAD_HALF:HEAD_HALF + a_dim].set(ws)

    bh = jnp.zeros((1, OUT_PAD), jnp.float32)
    bh = bh.at[:, :a_dim].set(bmu)
    bh = bh.at[:, HEAD_HALF:HEAD_HALF + a_dim].set(bs)

    return (w1_p.astype(jnp.bfloat16), b1_p,
            wh.astype(jnp.bfloat16), bh)


def _reference(x, params):
    w1, b1, wmu, bmu, ws, bs = params
    a1 = jnp.clip(x @ w1 + b1, 0.0, 6.0)
    mu = 2.0 * jnp.tanh(a1 @ wmu + bmu)
    sigma = jax.nn.softplus(a1 @ ws + bs) + 0.001
    return mu, sigma


if __name__ == "__main__":
    key = jax.random.PRNGKey(0)
    kx, kp = jax.random.split(key)

    s_dim = 16   # small state dim
    a_dim = 6    # matches choose_action's .view(6)
    batch = 8

    x = jax.random.normal(kx, (batch, s_dim), jnp.float32)
    params = init_params(kp, s_dim, a_dim)
    packed = pack_params(params)

    mu, sigma = actor_forward(x, packed, a_dim=a_dim)
    jax.block_until_ready((mu, sigma))

    mu_ref, sigma_ref = _reference(x, params)
    assert mu.shape == (batch, a_dim) and sigma.shape == (batch, a_dim)
    # bf16 MXU inputs -> compare against the f32 reference at a looser tol.
    assert jnp.allclose(mu, mu_ref, atol=1e-2, rtol=1e-2)
    assert jnp.allclose(sigma, sigma_ref, atol=1e-2, rtol=1e-2)
    assert bool(jnp.all(sigma > 0.0))

    print("KERNEL_OK")
</pallas_src>

<mosaic_0001>
module attributes {stable_mosaic.version = 11 : i64} {
  func.func @_actor_kernel(%arg0: i32, %arg1: memref<8x16xbf16, #tpu.memory_space<vmem>>, %arg2: memref<16x256xbf16, #tpu.memory_space<vmem>>, %arg3: memref<1x256xf32, #tpu.memory_space<vmem>>, %arg4: memref<256x128xbf16, #tpu.memory_space<vmem>>, %arg5: memref<1x128xf32, #tpu.memory_space<vmem>>, %arg6: memref<8x128xf32, #tpu.memory_space<vmem>>) attributes {dimension_semantics = [#tpu.dimension_semantics<parallel>], iteration_bounds = array<i64: 1>, scalar_prefetch = 0 : i64, scratch_operands = 0 : i64, tpu.core_type = #tpu.core_type<tc>, window_params = [{transform_indices = @transform_0, window_bounds = array<i64: 8, 16>}, {pipeline_mode = #tpu.pipeline_mode<synchronous>, transform_indices = @transform_1, window_bounds = array<i64: 16, 256>}, {pipeline_mode = #tpu.pipeline_mode<synchronous>, transform_indices = @transform_2, window_bounds = array<i64: 1, 256>}, {pipeline_mode = #tpu.pipeline_mode<synchronous>, transform_indices = @transform_3, window_bounds = array<i64: 256, 128>}, {pipeline_mode = #tpu.pipeline_mode<synchronous>, transform_indices = @transform_4, window_bounds = array<i64: 1, 128>}, {transform_indices = @transform_5, window_bounds = array<i64: 8, 128>}]} {
    %c0 = arith.constant 0 : index
    %c0_0 = arith.constant 0 : index
    %0 = vector.load %arg1[%c0, %c0_0] : memref<8x16xbf16, #tpu.memory_space<vmem>>, vector<8x16xbf16>
    %c0_1 = arith.constant 0 : index
    %c0_2 = arith.constant 0 : index
    %1 = vector.load %arg2[%c0_1, %c0_2] : memref<16x256xbf16, #tpu.memory_space<vmem>>, vector<16x256xbf16>
    %cst = arith.constant dense<0.000000e+00> : vector<8x256xf32>
    %2 = tpu.matmul %0, %1, %cst {dimension_numbers = #tpu.dot_dimension_numbers<[1], [0], [0], [1], [0, 0, 1, 1], [], []>} : vector<8x16xbf16>, vector<16x256xbf16>, vector<8x256xf32> -> vector<8x256xf32>
    %c0_3 = arith.constant 0 : index
    %c0_4 = arith.constant 0 : index
    %3 = vector.load %arg3[%c0_3, %c0_4] : memref<1x256xf32, #tpu.memory_space<vmem>>, vector<1x256xf32>
    %4 = vector.broadcast %3 : vector<1x256xf32> to vector<8x256xf32>
    %5 = arith.addf %2, %4 : vector<8x256xf32>
    %cst_5 = arith.constant 0.000000e+00 : f32
    %cst_6 = arith.constant 6.000000e+00 : f32
    %6 = vector.broadcast %cst_5 : f32 to vector<8x256xf32>
    %7 = arith.maximumf %6, %5 : vector<8x256xf32>
    %8 = vector.broadcast %cst_6 : f32 to vector<8x256xf32>
    %9 = arith.minimumf %8, %7 : vector<8x256xf32>
    %10 = arith.truncf %9 : vector<8x256xf32> to vector<8x256xbf16>
    %c0_7 = arith.constant 0 : index
    %c0_8 = arith.constant 0 : index
    %11 = vector.load %arg4[%c0_7, %c0_8] : memref<256x128xbf16, #tpu.memory_space<vmem>>, vector<256x128xbf16>
    %cst_9 = arith.constant dense<0.000000e+00> : vector<8x128xf32>
    %12 = tpu.matmul %10, %11, %cst_9 {dimension_numbers = #tpu.dot_dimension_numbers<[1], [0], [0], [1], [0, 0, 1, 1], [], []>} : vector<8x256xbf16>, vector<256x128xbf16>, vector<8x128xf32> -> vector<8x128xf32>
    %c0_10 = arith.constant 0 : index
    %c0_11 = arith.constant 0 : index
    %13 = vector.load %arg5[%c0_10, %c0_11] : memref<1x128xf32, #tpu.memory_space<vmem>>, vector<1x128xf32>
    %14 = vector.broadcast %13 : vector<1x128xf32> to vector<8x128xf32>
    %15 = arith.addf %12, %14 : vector<8x128xf32>
    %16 = tpu.iota {dimensions = array<i32: 1>} : vector<8x128xi32>
    %17 = math.tanh %15 : vector<8x128xf32>
    %cst_12 = arith.constant 2.000000e+00 : f32
    %18 = vector.broadcast %cst_12 : f32 to vector<8x128xf32>
    %19 = arith.mulf %18, %17 : vector<8x128xf32>
    %20 = math.absf %15 : vector<8x128xf32>
    %cst_13 = arith.constant 0.000000e+00 : f32
    %21 = vector.broadcast %cst_13 : f32 to vector<8x128xf32>
    %22 = arith.subf %21, %20 : vector<8x128xf32>
    %23 = math.exp %22 : vector<8x128xf32>
    %24 = math.log1p %23 : vector<8x128xf32>
    %cst_14 = arith.constant 0.000000e+00 : f32
    %25 = vector.broadcast %cst_14 : f32 to vector<8x128xf32>
    %26 = arith.maximumf %15, %25 : vector<8x128xf32>
    %27 = arith.addf %24, %26 : vector<8x128xf32>
    %cst_15 = arith.constant 1.000000e-03 : f32
    %28 = vector.broadcast %cst_15 : f32 to vector<8x128xf32>
    %29 = arith.addf %27, %28 : vector<8x128xf32>
    %c64_i32 = arith.constant 64 : i32
    %30 = vector.broadcast %c64_i32 : i32 to vector<8x128xi32>
    %31 = arith.cmpi slt, %16, %30 : vector<8x128xi32>
    %32 = arith.select %31, %19, %29 : vector<8x128xi1>, vector<8x128xf32>
    %c0_16 = arith.constant 0 : index
    %c0_17 = arith.constant 0 : index
    %33 = vector.load %arg6[%c0_16, %c0_17] : memref<8x128xf32, #tpu.memory_space<vmem>>, vector<8x128xf32>
    tpu.vector_store %arg6[%c0_16, %c0_17], %32 {strides = array<i32>} : memref<8x128xf32, #tpu.memory_space<vmem>>, vector<8x128xf32>,
    return
  }
  func.func @transform_0(%arg0: i32) -> (i32, i32) {
    %c0_i32 = arith.constant 0 : i32
    %c0_i32_0 = arith.constant 0 : i32
    return %arg0, %c0_i32 : i32, i32
  }
  func.func @transform_1(%arg0: i32) -> (i32, i32) {
    %c0_i32 = arith.constant 0 : i32
    %c0_i32_0 = arith.constant 0 : i32
    %c0_i32_1 = arith.constant 0 : i32
    return %c0_i32, %c0_i32_0 : i32, i32
  }
  func.func @transform_2(%arg0: i32) -> (i32, i32) {
    %c0_i32 = arith.constant 0 : i32
    %c0_i32_0 = arith.constant 0 : i32
    %c0_i32_1 = arith.constant 0 : i32
    return %c0_i32, %c0_i32_0 : i32, i32
  }
  func.func @transform_3(%arg0: i32) -> (i32, i32) {
    %c0_i32 = arith.constant 0 : i32
    %c0_i32_0 = arith.constant 0 : i32
    %c0_i32_1 = arith.constant 0 : i32
    return %c0_i32, %c0_i32_0 : i32, i32
  }
  func.func @transform_4(%arg0: i32) -> (i32, i32) {
    %c0_i32 = arith.constant 0 : i32
    %c0_i32_0 = arith.constant 0 : i32
    %c0_i32_1 = arith.constant 0 : i32
    return %c0_i32, %c0_i32_0 : i32, i32
  }
  func.func @transform_5(%arg0: i32) -> (i32, i32) {
    %c0_i32 = arith.constant 0 : i32
    %c0_i32_0 = arith.constant 0 : i32
    return %arg0, %c0_i32 : i32, i32
  }
}

</mosaic_0001>

<bundles_post_ra>
// kernel: actor_forward.1
= control target key start
LH: loop header
LB: loop body
LE: loop exit
PB: predicated region body
PF: predicated region fallthrough
CT: control target
= control target key end

     0   :  { %10 = vsyncpa [#allocation3], 0  ;;  %s502_s0 = inlined_call_operand.vmem [shape: bf16[8,16], index: 0, kind: input, shape index: {}]   ;;  %s503_s1 = inlined_call_operand.hbm [shape: bf16[16,256], index: 1, kind: input, shape index: {}]   ;;  %s504_s2 = inlined_call_operand.vmem [shape: f32[1,256], index: 2, kind: input, shape index: {}]   ;;  %s505_s3 = inlined_call_operand.hbm [shape: bf16[256,128], index: 3, kind: input, shape index: {}]   ;;  %s506_s4 = inlined_call_operand.vmem [shape: f32[1,128], index: 4, kind: input, shape index: {}]   ;;  %s507_s5 = inlined_call_operand.vmem [shape: f32[8,128], index: 5, kind: output, shape index: {}]  }
   0x1   :  { %11 = vsyncpa [#allocation5], 0  ;;  %s447_s18 = smov [#allocation2]  }
   0x2   :  { %s19_s19 = sshll.u32 %s447_s18, 4  ;;  %s20_s19 = int_to_ptr.vmem [resolvable:$true] %s19_s19 }
   0x3   :  { %s411_s20 = scalar_lea.vmem %s20_s19, 256  ;;  %p416_p1 = scmp.lt.s32.totalorder %s20_s19, %s20_s19 }
   0x4   :  { %p412_p0 = scmp.ne.s32.totalorder %s20_s19, %s411_s20  ;;  %p417_p2 = scmp.lt.s32.totalorder %s411_s20, %s411_s20 }
   0x6   :  { %p418_p3 = por %p417_p2, %p416_p1 }
   0x8   :  { %p419_p4 = pnand %p418_p3, %p412_p0 }
   0xa   :  { %422 = shalt.err (!%p419_p4)
}
   0xb   :  { %s448_s21 = smov 128   ;;  %s449_s22 = smov 8  }
   0xc   :  { %25 = dma.hbm_to_vmem [thread:$0]  %s503_s1, 256, %s20_s19, [#allocation3], %s448_s21, %s448_s21, %s449_s22  }
   0xd   :  { %s450_s25 = smov [#allocation4]  }
   0xe   :  { %s33_s26 = sshll.u32 %s450_s25, 4  ;;  %s34_s26 = int_to_ptr.vmem [resolvable:$true] %s33_s26 }
   0xf   :  { %s431_s27 = scalar_lea.vmem %s34_s26, 2048  ;;  %p436_p6 = scmp.lt.s32.totalorder %s34_s26, %s34_s26 }
  0x10   :  { %p432_p5 = scmp.ne.s32.totalorder %s34_s26, %s431_s27  ;;  %p437_p7 = scmp.lt.s32.totalorder %s431_s27, %s431_s27 }
  0x12   :  { %p438_p8 = por %p437_p7, %p436_p6 }
  0x14   :  { %p439_p9 = pnand %p438_p8, %p432_p5 }
  0x16   :  { %442 = shalt.err (!%p439_p9)
}
  0x17   :  { %s451_s28 = smov 64   ;;  %s452_s29 = smov 4  }
  0x18   :  { %39 = dma.hbm_to_vmem [thread:$0]  %s505_s3, 2048, %s34_s26, [#allocation5], %s451_s28, %s451_s28, %s452_s29  }
  0x19   :  { %443 = dma.done.wait [#allocation3], 256  }
  0x1a   :  { %444 = vsyncadd [#allocation3], 4294967040 }
  0x1b   :  { %445 = dma.done.wait [#allocation5], 2048  }
  0x1c   :  { %446 = vsyncadd [#allocation5], 4294965248  ;;  %v453_v0 = vmov 0   ;;  %v378_v1 = vld [vmem:[#allocation2 + $0x4] ss:$8 sps:$4 sm:$0xff]   ;;  %vm74_vm0 = vcmask 130048   ;;  %v54_v20 = vlaneseq }
  0x1d   :  { %110 = vmatprep.mubr.bf16.mxu0 %v453_v0  ;;  %v380_v2 = vld [vmem:[#allocation2] ss:$8 sps:$4 sm:$0xff]   ;;  %92 = vmatprep.subr.bf16.mxu0 %v378_v1  ;;  %v385_v8 = vld [vmem:[#allocation4 + $0x68] sm:$0xff]   ;;  %v387_v10 = vld [vmem:[#allocation4 + $0x60] sm:$0xff]  }
  0x1e   :  { %v49_v3 = vld [vmem:[%s502_s0] sm:$0xf]  ;;  %v381_v4 = vld [vmem:[#allocation4 + $0x78] sm:$0xff]   ;;  %93 = vmatpush1.bf16.msra.mxu0 %v380_v2  ;;  %v386_v9 = vld [vmem:[#allocation4 + $0x28] sm:$0xff]   ;;  %v55_v21 = vshrl.u32 %v54_v20, 7  ;;  %v301_v55 = vand.u32 127, %v54_v20 }
  0x1f   :  { %v382_v5 = vld [vmem:[#allocation4 + $0x38] sm:$0xff]   ;;  %349 = vmatprep.subr.bf16.mxu1 %v381_v4  ;;  %v383_v6 = vld [vmem:[#allocation4 + $0x70] sm:$0xff]   ;;  %v388_v11 = vld [vmem:[#allocation4 + $0x20] sm:$0xff]  }
  0x20   :  { %350 = vmatpush3.bf16.msra.mxu1 %v382_v5  ;;  %v384_v7 = vld [vmem:[#allocation4 + $0x30] sm:$0xff]   ;;  %v389_v12 = vld [vmem:[#allocation4 + $0x58] sm:$0xff]   ;;  %v393_v16 = vld [vmem:[#allocation4 + $0x48] sm:$0xff]   ;;  %v56_v22 = vsub.s32 0, %v55_v21  ;;  %v60_v24 = vsub.s32 1, %v55_v21  ;;  %vm320_vm2 = vcmp.lt.s32.totalorder %v301_v55, 64 }
  0x21   :  { %331 = vmatmul.mubr.msk.bf16.vlgmr.msra.gmra.mxu0 %vm74_vm0, %v49_v3  ;;  %351 = vmatprep.subr.bf16.mxu1 %v383_v6  ;;  %v390_v13 = vld [vmem:[#allocation4 + $0x18] sm:$0xff]   ;;  %v391_v14 = vld [vmem:[#allocation4 + $0x50] sm:$0xff]   ;;  %v394_v17 = vld [vmem:[#allocation4 + $0x8] sm:$0xff]  }
  0x22   :  { %v392_v15 = vld [vmem:[#allocation4 + $0x10] sm:$0xff]   ;;  %v395_v18 = vld [vmem:[#allocation4 + $0x40] sm:$0xff]  }
  0x23   :  { %v396_v19 = vld [vmem:[#allocation4] sm:$0xff]   ;;  %v52_v23 = vld [vmem:[%s504_s2] sm:$0x3] }
  0x24   :  { %352 = vmatpush3.bf16.msra.mxu1 %v384_v7  ;;  %v57_v25 = vrot.slane %v52_v23, %v56_v22  ;;  %v61_v26 = vrot.slane %v52_v23, %v60_v24  ;;  %v332_v40 = vld [vmem:[%s506_s4] ss:$0 sm:$0xff] }
  0x25   :  { %353 = vmatprep.subr.bf16.mxu1 %v385_v8 }
  0x28   :  { %354 = vmatpush3.bf16.msra.mxu1 %v386_v9 }
  0x29   :  { %355 = vmatprep.subr.bf16.mxu1 %v387_v10 }
  0x2c   :  { %356 = vmatpush3.bf16.msra.mxu1 %v388_v11 }
  0x2d   :  { %357 = vmatprep.subr.bf16.mxu1 %v389_v12 }
  0x30   :  { %358 = vmatpush3.bf16.msra.mxu1 %v390_v13 }
  0x31   :  { %359 = vmatprep.subr.bf16.mxu1 %v391_v14 }
  0x34   :  { %360 = vmatpush3.bf16.msra.mxu1 %v392_v15 }
  0x35   :  { %361 = vmatprep.subr.bf16.mxu1 %v393_v16 }
  0x38   :  { %362 = vmatpush3.bf16.msra.mxu1 %v394_v17 }
  0x39   :  { %363 = vmatprep.subr.bf16.mxu1 %v395_v18 }
  0x3c   :  { %364 = vmatpush3.bf16.msra.mxu1 %v396_v19 }
  0xe1   :  { %v112_v27 = vpop.f32.mrf.mxu0 }
  0xe2   :  { %v113_v28 = vadd.f32 %v112_v27, %v57_v25 }
  0xe3   :  { %v114_v29 = vpop.f32.mrf.mxu0 }
  0xe4   :  { %v119_v30 = vmax.f32 %v113_v28, 0.0  ;;  %v115_v31 = vadd.f32 %v114_v29, %v61_v26 }
  0xe5   :  { %v116_v32 = vpop.f32.mrf.mxu0 }
  0xe6   :  { %v120_v33 = vmax.f32 %v115_v31, 0.0  ;;  %v121_v34 = vmin.f32 %v119_v30, 6.0 }
  0xe7   :  { %v117_v35 = vpop.f32.mrf.mxu0 }
  0xe8   :  { %v122_v36 = vmin.f32 %v120_v33, 6.0  ;;  %v123_v38 = vpack.c.bf16 %v121_v34, %v121_v34 }
  0xea   :  { %v124_v37 = vpack.c.bf16 %v122_v36, %v122_v36 }
  0xec   :  { %292 = vmatprep.mubr.bf16.mxu1 %v124_v37 }
  0xed   :  { %293 = vmatmul.mubr.bf16.vlgmr.msra.gmra.mxu1 %v123_v38 }
 0x1ad   :  { %v365_v39 = vpop.f32.mrf.mxu1 }
 0x1af   :  { %v366_v41 = vpop.f32.mrf.mxu1 }
 0x1b0   :  { %v367_v42 = vadd.f32 %v366_v41, %v365_v39 }
 0x1b1   :  { %v368_v43 = vpop.f32.mrf.mxu1 }
 0x1b2   :  { %v295_v44 = vadd.f32 %v367_v42, %v332_v40 }
 0x1b3   :  { %v369_v45 = vpop.f32.mrf.mxu1 }
 0x1b4   :  { %v304_v46 = vand.u32 2147483647, %v295_v44  ;;  %v317_v58 = vmax.f32 %v295_v44, 0.0 }
 0x1b6   :  { %v305_v47 = vsub.f32 0.0, %v304_v46 }
 0x1b8   :  { %v306_v48 = vmul.f32 1.442695, %v305_v47 }
 0x1ba   :  { %397 = vpow2.f32 %v306_v48 }
 0x1c7   :  { %v398_v49 = vpop.eup %397 }
 0x1c8   :  { %v308_v50 = vadd.f32 1.0, %v398_v49  ;;  %v311_v51 = vmul.f32 -0.5, %v398_v49  ;;  %v314_v53 = vand.u32 2147483647, %v398_v49 }
 0x1ca   :  { %399 = vlog2.f32 %v308_v50  ;;  %v312_v52 = vadd.f32 1.0, %v311_v51  ;;  %vm315_vm1 = vcmp.lt.f32.partialorder %v314_v53, 0.0004427343 }
 0x1cb   :  { %401 = vtanh.f32 %v295_v44 }
 0x1cc   :  { %v313_v57 = vmul.f32 %v398_v49, %v312_v52 }
 0x1d7   :  { %v400_v54 = vpop.eup %399 }
 0x1d8   :  { %v310_v56 = vmul.f32 0.6931472, %v400_v54  ;;  %v402_v59 = vpop.eup %401 }
 0x1d9   :  { %v303_v62 = vmul.f32 2.0, %v402_v59 }
 0x1da   :  { %v316_v60 = vsel %vm315_vm1, %v313_v57, %v310_v56 }
 0x1db   :  { %v318_v61 = vadd.f32 %v317_v58, %v316_v60 }
 0x1dd   :  { %v319_v63 = vadd.f32 0.001, %v318_v61 }
 0x1df   :  { %v321_v0 = vsel %vm320_vm2, %v303_v62, %v319_v63 }
 0x1e0   :  { %322 = vst [vmem:[%s507_s5] sm:$0xff] %v321_v0 }
 0x1e1   :  { %327 = vsyncpa [#allocation3], 1 }
 0x1e2   :  { %328 = vsyncpa [#allocation5], 1 }

</bundles_post_ra>
